<compile_context>
chip_gen: v6e
topology: v6e:2x2x1
jax: 0.10.0
libtpu: 0.0.40
codegen_flags: <defaults>
</compile_context>

<pallas_src>
import functools
import math

import jax
import jax.numpy as jnp
from jax.experimental import pallas as pl
from jax.experimental.pallas import tpu as pltpu


def _pe_add_kernel(consts_ref, x_ref, o_ref, pe_ref, *, fold):
    # x_ref / o_ref: (B, tile_rows, dv) VMEM tiles.  pe_ref: (tile_rows, dv) f32.
    tile_rows = x_ref.shape[1]

    # Per-lane constants (precomputed on the host, constant across grid steps).
    consts = consts_ref[...]                 # (3, dv) f32
    inv_freq = consts[0:1, :]                # (1, dv)  exp(-pair * ln(1e4)/D)
    is_odd = consts[1:2, :]                  # (1, dv)  1.0 for odd feature dims
    pos_in_row = consts[2:3, :]              # (1, dv)  folded position within a row

    # Absolute sequence offset (in original positions) of this tile.
    seq_off = (pl.program_id(0) * (tile_rows * fold)).astype(jnp.float32)
    row = jax.lax.broadcasted_iota(jnp.int32, (tile_rows, 1), 0).astype(jnp.float32)
    pos = seq_off + row * jnp.float32(fold) + pos_in_row     # (tile_rows, dv)
    ang = pos * inv_freq

    # Exact sin for even dims, exact cos for odd dims; materialized ONCE per
    # block into VMEM scratch so it is not recomputed per batch element.
    pe_ref[...] = jnp.where(is_odd > 0.5, jnp.cos(ang), jnp.sin(ang))

    # Broadcast-add across batch in f32; single cast to the output dtype.
    o_ref[...] = (x_ref[...].astype(jnp.float32)
                  + pe_ref[...][None, :, :]).astype(o_ref.dtype)


def _lane_constants(d_model: int, dv: int) -> jax.Array:
    """(3, dv) f32 rows: inv_freq, odd-dim mask, folded position offset."""
    lane = jnp.arange(dv, dtype=jnp.int32)
    dim = lane % d_model
    pair = (2 * (dim // 2)).astype(jnp.float32)
    inv_freq = jnp.exp(pair * (-math.log(10000.0) / d_model))
    is_odd = (dim % 2).astype(jnp.float32)
    pos_in_row = (lane // d_model).astype(jnp.float32)
    return jnp.stack([inv_freq, is_odd, pos_in_row]).astype(jnp.float32)


def _target_block_bytes() -> int:
    # ~4 MiB blocks already hit ~86% of HBM roofline on v5e/v6e and amortize
    # the ~0.35us per-grid-step overhead; go slightly larger on v7x (3.2 TB/s
    # HBM makes the fixed step overhead relatively bigger).
    target = 4 << 20
    try:  # guarded hardware probe; any failure just keeps the 4 MiB default
        chip = str(getattr(pltpu.get_tpu_info(), "chip_version", "")).lower()
        if "7" in chip:
            target = 6 << 20
    except Exception:
        pass
    return target


def _pick_tile_rows(s_rows: int, row_hbm_bytes: int, row_vmem_bytes: int,
                    sub_align: int, target_bytes: int) -> int:
    """Seq-tile size (in folded rows) for one block of shape (B, rows, dv)."""
    total_bytes = s_rows * row_hbm_bytes
    # Tiny input: one block.  Block dim == full array dim is always legal.
    if total_bytes <= (1 << 20) or s_rows <= 2 * sub_align:
        return s_rows

    # Rows per block targeting ~target_bytes of HBM data, capped so that
    # double-buffered in+out + f32 PE scratch + f32 intermediates fit well
    # inside the 32 MiB VMEM limit we request.
    budget = max(sub_align, target_bytes // row_hbm_bytes)
    budget = min(budget, max(sub_align, (28 << 20) // row_vmem_bytes))

    # Keep enough blocks that a 2-TensorCore chip (v7x) gets >= 2 pipeline
    # steps per core on large inputs; on single-TC v5e/v6e this only costs a
    # slightly smaller (still >= target/2) block.
    min_blocks = 4 if total_bytes >= 4 * target_bytes else 2
    budget = min(budget, max(sub_align, s_rows // min_blocks))

    cap = max(sub_align, (budget // sub_align) * sub_align)

    # Prefer a sublane-aligned tile that (a) divides s_rows (no ragged tail /
    # masked boundary stores) and (b) gives an EVEN block count so the
    # 'parallel' axis splits evenly across v7x's two TensorCores.
    best_div = None
    lo = max(sub_align, cap // 2)
    for t in range(cap, lo - 1, -sub_align):
        if s_rows % t == 0:
            if (s_rows // t) % 2 == 0:
                return t
            if best_div is None:
                best_div = t
    if best_div is not None:
        return best_div
    return cap  # ragged tail: Pallas clips/masks the boundary block's writes


def positional_encoding_add(x: jax.Array, *, max_len: int = 8192,
                            in_place: bool = False) -> jax.Array:
    """x: [batch, seq_len, d_model] -> x + pe[:, :seq_len] (add done in f32)."""
    B, S, D = x.shape
    assert S <= max_len, "seq_len exceeds max_len"
    assert D % 2 == 0, "d_model must be even (as in the PyTorch module)"

    # Generalized lane folding: fold f positions per row so the block's last
    # dim (f*D) is a multiple of 128 -> lane-dense, unmasked stores.
    f = 128 // math.gcd(D, 128)
    fold = f if (f > 1 and S % f == 0) else 1
    s_rows = S // fold
    dv = D * fold
    xv = x.reshape(B, s_rows, dv) if fold > 1 else x

    itemsize = jnp.dtype(x.dtype).itemsize
    sub_align = max(8, 32 // itemsize)            # 8 f32 / 16 bf16 / 32 int8
    row_hbm = B * dv * itemsize                   # one folded row of x in HBM
    # VMEM cost per folded row: 2x in + 2x out buffers, f32 PE scratch, plus
    # headroom for f32 elementwise intermediates of the block expression.
    row_vmem = 4 * row_hbm + 4 * dv + 8 * B * dv
    tile_rows = _pick_tile_rows(s_rows, row_hbm, row_vmem, sub_align,
                                _target_block_bytes())
    grid = (pl.cdiv(s_rows, tile_rows),)

    consts = _lane_constants(D, dv)

    data_spec = pl.BlockSpec((B, tile_rows, dv), lambda s: (0, s, 0))
    const_spec = pl.BlockSpec((3, dv), lambda s: (0, 0))
    kernel = functools.partial(_pe_add_kernel, fold=fold)

    cost = pl.CostEstimate(
        flops=B * S * D,                          # the broadcast add
        transcendentals=2 * S * D,                # sin + cos, once per block (not per batch)
        bytes_accessed=2 * B * S * D * itemsize,  # purely bandwidth bound
    )

    out = pl.pallas_call(
        kernel,
        out_shape=jax.ShapeDtypeStruct((B, s_rows, dv), x.dtype),
        grid_spec=pltpu.PrefetchScalarGridSpec(
            num_scalar_prefetch=0,
            grid=grid,
            in_specs=[const_spec, data_spec],
            out_specs=data_spec,
            scratch_shapes=[pltpu.VMEM((tile_rows, dv), jnp.float32)],
        ),
        compiler_params=pltpu.CompilerParams(
            dimension_semantics=("parallel",),
            vmem_limit_bytes=32 * 1024 * 1024,
        ),
        cost_estimate=cost,
        # Optional in-place add when the caller no longer needs x.
        input_output_aliases={1: 0} if in_place else {},
    )(consts, xv)

    return out.reshape(B, S, D) if fold > 1 else out


def _reference(x: jax.Array) -> jax.Array:
    """Pure-JAX replica of the PyTorch module for correctness checking."""
    B, S, D = x.shape
    position = jnp.arange(S, dtype=jnp.float32)[:, None]
    div_term = jnp.exp(
        jnp.arange(0, D, 2, dtype=jnp.float32) * (-math.log(10000.0) / D)
    )
    pe = jnp.zeros((S, D), jnp.float32)
    pe = pe.at[:, 0::2].set(jnp.sin(position * div_term))
    pe = pe.at[:, 1::2].set(jnp.cos(position * div_term))
    return x + pe[None, :, :]


if __name__ == "__main__":
    key = jax.random.PRNGKey(0)

    # Small demo shape implied by the module: batch=2, seq=8, d_model=32.
    B, S, D = 2, 8, 32
    x = jax.random.normal(key, (B, S, D), dtype=jnp.float32)
    out = jax.block_until_ready(positional_encoding_add(x))
    ref = _reference(x)
    assert out.shape == x.shape and out.dtype == x.dtype
    assert jnp.allclose(out, ref, atol=1e-5, rtol=1e-5)

    # Generalized lane folding: d_model=96 does not divide 128 (fold=4, dv=384).
    xg = jax.random.normal(jax.random.PRNGKey(1), (2, 64, 96), dtype=jnp.float32)
    assert jnp.allclose(positional_encoding_add(xg), _reference(xg),
                        atol=1e-5, rtol=1e-5)

    # Multi-tile check: exercises seq tiling (even block count) and the
    # program_id sequence-offset path; exact sin/cos so tolerance stays tight.
    x2 = jax.random.normal(jax.random.PRNGKey(2), (2, 1024, 256),
                           dtype=jnp.float32)
    assert jnp.allclose(positional_encoding_add(x2), _reference(x2),
                        atol=1e-4, rtol=1e-5)

    # Ragged tail: 2051 = 7 * 293 has no aligned divisor in the search window,
    # so the last block is a masked boundary block.
    x3 = jax.random.normal(jax.random.PRNGKey(3), (1, 2051, 256),
                           dtype=jnp.float32)
    assert jnp.allclose(positional_encoding_add(x3), _reference(x3),
                        atol=2e-4, rtol=1e-4)

    # bf16 input: add performed in f32 inside the kernel, cast once at the end.
    xb = x2.astype(jnp.bfloat16)
    ob = jax.block_until_ready(positional_encoding_add(xb))
    rb = _reference(xb.astype(jnp.float32)).astype(jnp.bfloat16)
    assert ob.dtype == jnp.bfloat16
    assert jnp.allclose(ob.astype(jnp.float32), rb.astype(jnp.float32),
                        atol=5e-2, rtol=5e-2)

    print("KERNEL_OK")
</pallas_src>

<mosaic_0001>
module attributes {stable_mosaic.version = 11 : i64} {
  func.func @_pe_add_kernel(%arg0: i32, %arg1: memref<3x128xf32, #tpu.memory_space<vmem>>, %arg2: memref<2x2x128xf32, #tpu.memory_space<vmem>>, %arg3: memref<2x2x128xf32, #tpu.memory_space<vmem>>, %arg4: memref<2x128xf32, #tpu.memory_space<vmem>>) attributes {dimension_semantics = [#tpu.dimension_semantics<parallel>], iteration_bounds = array<i64: 1>, scalar_prefetch = 0 : i64, scratch_operands = 1 : i64, tpu.core_type = #tpu.core_type<tc>, window_params = [{pipeline_mode = #tpu.pipeline_mode<synchronous>, transform_indices = @transform_0, window_bounds = array<i64: 3, 128>}, {transform_indices = @transform_1, window_bounds = array<i64: 2, 2, 128>}, {transform_indices = @transform_2, window_bounds = array<i64: 2, 2, 128>}]} {
    %c0 = arith.constant 0 : index
    %c0_0 = arith.constant 0 : index
    %0 = vector.load %arg1[%c0, %c0_0] : memref<3x128xf32, #tpu.memory_space<vmem>>, vector<3x128xf32>
    %1 = vector.extract_strided_slice %0 {offsets = [0, 0], sizes = [1, 128], strides = [1, 1]} : vector<3x128xf32> to vector<1x128xf32>
    %2 = vector.extract_strided_slice %0 {offsets = [1, 0], sizes = [1, 128], strides = [1, 1]} : vector<3x128xf32> to vector<1x128xf32>
    %3 = vector.extract_strided_slice %0 {offsets = [2, 0], sizes = [1, 128], strides = [1, 1]} : vector<3x128xf32> to vector<1x128xf32>
    %c8_i32 = arith.constant 8 : i32
    %4 = arith.muli %arg0, %c8_i32 : i32
    %5 = arith.sitofp %4 : i32 to f32
    %6 = tpu.iota {dimensions = array<i32: 0>} : vector<2x1xi32>
    %7 = arith.sitofp %6 : vector<2x1xi32> to vector<2x1xf32>
    %cst = arith.constant 4.000000e+00 : f32
    %8 = vector.broadcast %cst : f32 to vector<2x1xf32>
    %9 = arith.mulf %7, %8 : vector<2x1xf32>
    %10 = vector.broadcast %5 : f32 to vector<2x1xf32>
    %11 = arith.addf %10, %9 : vector<2x1xf32>
    %12 = vector.broadcast %11 : vector<2x1xf32> to vector<2x128xf32>
    %13 = vector.broadcast %3 : vector<1x128xf32> to vector<2x128xf32>
    %14 = arith.addf %12, %13 : vector<2x128xf32>
    %15 = vector.broadcast %1 : vector<1x128xf32> to vector<2x128xf32>
    %16 = arith.mulf %14, %15 : vector<2x128xf32>
    %cst_1 = arith.constant 5.000000e-01 : f32
    %17 = vector.broadcast %cst_1 : f32 to vector<1x128xf32>
    %18 = arith.cmpf ogt, %2, %17 : vector<1x128xf32>
    %19 = math.cos %16 : vector<2x128xf32>
    %20 = math.sin %16 : vector<2x128xf32>
    %21 = vector.shape_cast %18 : vector<1x128xi1> to vector<1x128xi1>
    %22 = vector.broadcast %21 : vector<1x128xi1> to vector<2x128xi1>
    %23 = arith.select %22, %19, %20 : vector<2x128xi1>, vector<2x128xf32>
    %c0_2 = arith.constant 0 : index
    %c0_3 = arith.constant 0 : index
    %24 = vector.load %arg4[%c0_2, %c0_3] : memref<2x128xf32, #tpu.memory_space<vmem>>, vector<2x128xf32>
    tpu.vector_store %arg4[%c0_2, %c0_3], %23 {strides = array<i32>} : memref<2x128xf32, #tpu.memory_space<vmem>>, vector<2x128xf32>,
    %c0_4 = arith.constant 0 : index
    %c0_5 = arith.constant 0 : index
    %c0_6 = arith.constant 0 : index
    %25 = vector.load %arg2[%c0_4, %c0_5, %c0_6] : memref<2x2x128xf32, #tpu.memory_space<vmem>>, vector<2x2x128xf32>
    %c0_7 = arith.constant 0 : index
    %c0_8 = arith.constant 0 : index
    %26 = vector.load %arg4[%c0_7, %c0_8] : memref<2x128xf32, #tpu.memory_space<vmem>>, vector<2x128xf32>
    %27 = vector.shape_cast %26 : vector<2x128xf32> to vector<1x2x128xf32>
    %28 = vector.broadcast %27 : vector<1x2x128xf32> to vector<2x2x128xf32>
    %29 = arith.addf %25, %28 : vector<2x2x128xf32>
    %c0_9 = arith.constant 0 : index
    %c0_10 = arith.constant 0 : index
    %c0_11 = arith.constant 0 : index
    %30 = vector.load %arg3[%c0_9, %c0_10, %c0_11] : memref<2x2x128xf32, #tpu.memory_space<vmem>>, vector<2x2x128xf32>
    tpu.vector_store %arg3[%c0_9, %c0_10, %c0_11], %29 {strides = array<i32>} : memref<2x2x128xf32, #tpu.memory_space<vmem>>, vector<2x2x128xf32>,
    return
  }
  func.func @transform_0(%arg0: i32) -> (i32, i32) {
    %c0_i32 = arith.constant 0 : i32
    %c0_i32_0 = arith.constant 0 : i32
    %c0_i32_1 = arith.constant 0 : i32
    return %c0_i32, %c0_i32_0 : i32, i32
  }
  func.func @transform_1(%arg0: i32) -> (i32, i32, i32) {
    %c0_i32 = arith.constant 0 : i32
    %c0_i32_0 = arith.constant 0 : i32
    %c0_i32_1 = arith.constant 0 : i32
    return %c0_i32, %arg0, %c0_i32_0 : i32, i32, i32
  }
  func.func @transform_2(%arg0: i32) -> (i32, i32, i32) {
    %c0_i32 = arith.constant 0 : i32
    %c0_i32_0 = arith.constant 0 : i32
    %c0_i32_1 = arith.constant 0 : i32
    return %c0_i32, %arg0, %c0_i32_0 : i32, i32, i32
  }
}

</mosaic_0001>

<bundles_post_ra>
// kernel: tpu_custom_call.1
= control target key start
LH: loop header
LB: loop body
LE: loop exit
PB: predicated region body
PF: predicated region fallthrough
CT: control target
= control target key end

     0   :  { %7 = vsyncpa [#allocation4], 0  ;;  %s458_s0 = inlined_call_operand.hbm [shape: f32[3,128], index: 0, kind: input, shape index: {}]   ;;  %s459_s1 = inlined_call_operand.hbm [shape: f32[2,2,128], index: 1, kind: input, shape index: {}]   ;;  %s460_s2 = inlined_call_operand.hbm [shape: f32[2,2,128], index: 2, kind: output, shape index: {}]  }
   0x1   :  { %8 = vsyncpa [#allocation7], 0 }
   0x2   :  { %9 = vsyncpa [#allocation5], 0  ;;  %s392_s9 = smov [#allocation3]   ;;  %s393_s11 = smov [#allocation6]  }
   0x3   :  { %s16_s10 = sshll.u32 %s392_s9, 4  ;;  %s25_s12 = sshll.u32 %s393_s11, 4  ;;  %s17_s10 = int_to_ptr.vmem [resolvable:$true] %s16_s10  ;;  %s26_s12 = int_to_ptr.vmem [resolvable:$true] %s25_s12 }
   0x4   :  { %s334_s13 = scalar_lea.vmem %s17_s10, 64  ;;  %p339_p1 = scmp.lt.s32.totalorder %s17_s10, %s17_s10 }
   0x5   :  { %p335_p0 = scmp.ne.s32.totalorder %s17_s10, %s334_s13  ;;  %p340_p2 = scmp.lt.s32.totalorder %s334_s13, %s334_s13 }
   0x7   :  { %p341_p3 = por %p340_p2, %p339_p1 }
   0x9   :  { %p342_p4 = pnand %p341_p3, %p335_p0 }
   0xb   :  { %345 = shalt.err (!%p342_p4)
}
   0xc   :  { %19 = dma.hbm_to_vmem [thread:$0]  %s458_s0, 64, %s17_s10, [#allocation4]  }
   0xd   :  { %s354_s16 = scalar_lea.vmem %s26_s12, 64  ;;  %p359_p6 = scmp.lt.s32.totalorder %s26_s12, %s26_s12 }
   0xe   :  { %p355_p5 = scmp.ne.s32.totalorder %s26_s12, %s354_s16  ;;  %p360_p7 = scmp.lt.s32.totalorder %s354_s16, %s354_s16 }
  0x10   :  { %p361_p8 = por %p360_p7, %p359_p6 }
  0x12   :  { %p362_p9 = pnand %p361_p8, %p355_p5 }
  0x14   :  { %365 = shalt.err (!%p362_p9)
}
  0x15   :  { %s394_s17 = smov 32   ;;  %s395_s18 = smov 2  }
  0x16   :  { %31 = dma.hbm_to_vmem [thread:$0]  %s459_s1, 64, %s26_s12, [#allocation7], %s394_s17, %s394_s17, %s395_s18  }
  0x17   :  { %386 = dma.done.wait [#allocation4], 64  }
  0x18   :  { %387 = vsyncadd [#allocation4], 4294967232 }
  0x19   :  { %388 = dma.done.wait [#allocation7], 64  }
  0x1a   :  { %389 = vsyncadd [#allocation7], 4294967232  ;;  %v41_v0 = vlaneseq  ;;  %v38_v7 = vld [vmem:[#allocation3] sm:$0x7]  ;;  %v396_v10 = vmov 0   ;;  %s403_s0 = smov [#allocation8]  }
  0x1b   :  { %vm57_vm0 = vcmp.gt.f32.partialorder %v38_v7, 0.5  ;;  %v397_v26 = vmov 683565275   ;;  %v398_v28 = vmov 2475754826   ;;  %s285_s1 = sshll.u32 %s403_s0, 4  ;;  %s286_s1 = int_to_ptr.vmem [resolvable:$true] %s285_s1 }
  0x1c   :  { %v42_v1 = vshrl.u32 %v41_v0, 7  ;;  %v265_v11 = vsel %vm57_vm0, 1, %v396_v10  ;;  %v399_v30 = vmov 2131351028   ;;  %v400_v32 = vmov 2102212464   ;;  %p371_p11 = scmp.lt.s32.totalorder %s286_s1, %s286_s1 }
  0x1d   :  { %v401_v34 = vmov 920167782   ;;  %v402_v41 = vmov 1326507024   ;;  %s366_s21 = scalar_lea.vmem %s286_s1, 64 }
  0x1e   :  { %v43_v2 = vcvt.s32.f32 %v42_v1  ;;  %v49_v3 = vsub.s32 2, %v42_v1  ;;  %v54_v4 = vsub.s32 0, %v42_v1  ;;  %v268_v6 = vsub.s32 1, %v42_v1  ;;  %p367_p10 = scmp.ne.s32.totalorder %s286_s1, %s366_s21  ;;  %p372_p12 = scmp.lt.s32.totalorder %s366_s21, %s366_s21 }
  0x20   :  { %v44_v5 = vmul.f32 4.0, %v43_v2  ;;  %v50_v8 = vrot.slane %v38_v7, %v49_v3  ;;  %v55_v9 = vrot.slane %v38_v7, %v54_v4  ;;  %v428_v13 = vrot.slane %v265_v11, %v268_v6  ;;  %p373_p13 = por %p372_p12, %p371_p11 }
  0x22   :  { %v51_v12 = vadd.f32 %v50_v8, %v44_v5  ;;  %p374_p0 = pnand %p373_p13, %p367_p10 }
  0x24   :  { %v430_v14 = vmul.f32 %v55_v9, %v51_v12 }
  0x26   :  { %v61_v15 = vand.u32 2139095040, %v430_v14  ;;  %v58_v17 = vand.u32 2147483647, %v430_v14  ;;  %vm60_vm8 = vcmp.lt.s32.totalorder %v430_v14, 0  ;;  %vm150_vm0 = vweird.f32 %v430_v14 }
  0x28   :  { %v62_v16 = vshrl.u32 %v61_v15, 23  ;;  %v65_v20 = vand.u32 8388607, %v58_v17  ;;  %vm59_vm9 = vcmp.le.f32.partialorder %v58_v17, 0.7853982 }
  0x2a   :  { %v298_v18 = vadd.s32 4294967169, %v62_v16  ;;  %v66_v23 = vor.u32 8388608, %v65_v20 }
  0x2c   :  { %v68_v19 = vadd.s32 1, %v298_v18  ;;  %v106_v43 = vshll.u32 %v66_v23, 8 }
  0x2e   :  { %vm69_vm1 = vcmp.gt.s32.totalorder %v68_v19, 0 }
  0x2f   :  { %v70_v21 = vsel %vm69_vm1, %v68_v19, 0  ;;  %vm270_vm1 = vcmp.eq.s32.totalorder %v428_v13, 1 }
  0x30   :  { %v72_v22 = vand.u32 31, %v70_v21  ;;  %v71_v24 = vshrl.u32 %v70_v21, 5 }
  0x32   :  { %v73_v25 = vsub.s32 32, %v72_v22  ;;  %v75_v27 = vshll.u32 %v397_v26, %v72_v22  ;;  %v78_v29 = vshll.u32 %v398_v28, %v72_v22  ;;  %v81_v31 = vshll.u32 %v399_v30, %v72_v22 }
  0x33   :  { %v84_v33 = vshll.u32 %v400_v32, %v72_v22  ;;  %v87_v35 = vshll.u32 %v401_v34, %v72_v22  ;;  %vm90_vm2 = vcmp.lt.s32.totalorder %v71_v24, 1  ;;  %vm93_vm3 = vcmp.lt.s32.totalorder %v71_v24, 4 }
  0x34   :  { %v74_v36 = vshrl.u32 %v397_v26, %v73_v25  ;;  %v76_v37 = vshrl.u32 %v398_v28, %v73_v25  ;;  %v79_v38 = vshrl.u32 %v399_v30, %v73_v25  ;;  %v82_v39 = vshrl.u32 %v400_v32, %v73_v25 }
  0x35   :  { %v85_v40 = vshrl.u32 %v401_v34, %v73_v25  ;;  %v88_v42 = vshrl.u32 %v402_v41, %v73_v25  ;;  %vm91_vm4 = vcmp.lt.s32.totalorder %v71_v24, 2  ;;  %vm92_vm5 = vcmp.lt.s32.totalorder %v71_v24, 3 }
  0x36   :  { %v77_v44 = vor.u32 %v76_v37, %v75_v27  ;;  %v80_v45 = vor.u32 %v79_v38, %v78_v29  ;;  %v83_v46 = vor.u32 %v82_v39, %v81_v31 }
  0x37   :  { %v86_v47 = vor.u32 %v85_v40, %v84_v33  ;;  %v89_v48 = vor.u32 %v88_v42, %v87_v35 }
  0x38   :  { %v94_v49 = vsel %vm90_vm2, %v74_v36, %v77_v44  ;;  %v95_v50 = vsel %vm93_vm3, %v83_v46, 2102212464  ;;  %v98_v51 = vsel %vm90_vm2, %v77_v44, %v80_v45  ;;  %v102_v52 = vsel %vm90_vm2, %v80_v45, %v83_v46 }
  0x39   :  { %v96_v53 = vsel %vm92_vm5, %v80_v45, %v95_v50  ;;  %v99_v54 = vsel %vm93_vm3, %v86_v47, 920167782  ;;  %v103_v55 = vsel %vm93_vm3, %v89_v48, 1326507024  ;;  %v273_v50 = vld [vmem:[#allocation6] sm:$0x3] }
  0x3a   :  { %v100_v56 = vsel %vm92_vm5, %v83_v46, %v99_v54  ;;  %v104_v57 = vsel %vm92_vm5, %v86_v47, %v103_v55  ;;  %v97_v58 = vsel %vm91_vm4, %v94_v49, %v96_v53 }
  0x3b   :  { %v101_v59 = vsel %vm91_vm4, %v98_v51, %v100_v56  ;;  %v105_v60 = vsel %vm91_vm4, %v102_v52, %v104_v57  ;;  %v113_v1 = vmul.u32 %v106_v43, %v97_v58  ;;  %v274_v51 = vld [vmem:[#allocation6 + $0x2] sm:$0x3] }
  0x3c   :  { %v436_v61 = vmul.u32.u64.low %v106_v43, %v105_v60  ;;  %v437_v62 = vmul.u32.u64.high %v106_v43, %v105_v60, %v436_v61  ;;  %v439_v63 = vmul.u32.u64.low %v106_v43, %v101_v59  ;;  %v440_v0 = vmul.u32.u64.high %v106_v43, %v101_v59, %v439_v63 }
  0x3e   :  { %vm115_vm6 = vc.u32 %v437_v62, %v439_v63  ;;  %v116_v2 = vadd.s32 1, %v440_v0  ;;  %v114_v15 = vadd.s32 %v439_v63, %v437_v62 }
  0x40   :  { %v117_v3 = vsel %vm115_vm6, %v116_v2, %v440_v0 }
  0x41   :  { %v118_v4 = vadd.s32 %v117_v3, %v113_v1 }
  0x43   :  { %v119_v5 = vadd.s32 536870912, %v118_v4 }
  0x45   :  { %v120_v6 = vshrl.u32 %v119_v5, 30 }
  0x47   :  { %v121_v7 = vshll.u32 %v120_v6, 30  ;;  %v144_v29 = vsub.s32 4, %v120_v6 }
  0x49   :  { %v122_v8 = vsub.s32 %v118_v4, %v121_v7  ;;  %v145_v32 = vsel %vm60_vm8, %v144_v29, %v120_v6 }
  0x4a   :  { %v147_v34 = vsel %vm59_vm9, 0, %v145_v32 }
  0x4b   :  { %v124_v9 = vsub.s32 0, %v122_v8  ;;  %v254_v35 = vadd.s32 3, %v147_v34  ;;  %v151_v36 = vand.u32 3, %v147_v34 }
  0x4d   :  { %v299_v10 = vmin.u32 %v124_v9, %v122_v8  ;;  %v255_v37 = vand.u32 3, %v254_v35  ;;  %vm156_vm10 = vcmp.eq.s32.totalorder %v151_v36, 2  ;;  %vm153_vm12 = vcmp.eq.s32.totalorder %v151_v36, 0 }
  0x4e   :  { %vm152_vm14 = vcmp.lt.s32.totalorder %v151_v36, 2 }
  0x4f   :  { %v126_v11 = vclz %v299_v10  ;;  %vm260_vm11 = vcmp.eq.s32.totalorder %v255_v37, 2  ;;  %vm257_vm13 = vcmp.eq.s32.totalorder %v255_v37, 0  ;;  %vm256_vm15 = vcmp.lt.s32.totalorder %v255_v37, 2 }
  0x51   :  { %v300_v12 = vadd.s32 4294967294, %v126_v11 }
  0x53   :  { %vm301_vm7 = vcmp.lt.s32.totalorder %v300_v12, 0 }
  0x54   :  { %v129_v16 = vsel %vm301_vm7, 0, %v300_v12 }
  0x55   :  { %v130_v18 = vsub.s32 32, %v129_v16  ;;  %v131_v19 = vshll.u32 %v122_v8, %v129_v16  ;;  %v134_v20 = vsub.s32 4294967266, %v129_v16 }
  0x57   :  { %v132_v21 = vshrl.u32 %v114_v15, %v130_v18  ;;  %v135_v22 = vadd.s32 127, %v134_v20 }
  0x59   :  { %v133_v23 = vor.u32 %v132_v21, %v131_v19  ;;  %v136_v24 = vshll.u32 %v135_v22, 23 }
  0x5b   :  { %v137_v25 = vor.u32 4788187, %v136_v24  ;;  %v140_v26 = vcvt.s32.f32 %v133_v23 }
  0x5d   :  { %v138_v27 = vand.u32 2147483647, %v137_v25 }
  0x5f   :  { %v141_v28 = vmul.f32 %v140_v26, %v138_v27 }
  0x61   :  { %v142_v30 = vxor.u32 2147483648, %v141_v28 }
  0x63   :  { %v143_v31 = vsel %vm60_vm8, %v142_v30, %v141_v28 }
  0x64   :  { %v146_v33 = vsel %vm59_vm9, %v430_v14, %v143_v31 }
  0x65   :  { %322 = vcosq.f32 %v146_v33 }
  0x66   :  { %324 = vsinq.f32 %v146_v33 }
  0x72   :  { %v323_v38 = vpop.eup %322 }
  0x73   :  { %v325_v39 = vpop.eup %324  ;;  %v157_v40 = vxor.u32 2147483648, %v323_v38 }
  0x74   :  { %v154_v17 = vxor.u32 2147483648, %v325_v39 }
  0x75   :  { %v158_v41 = vsel %vm156_vm10, %v157_v40, %v325_v39  ;;  %v262_v42 = vsel %vm260_vm11, %v157_v40, %v325_v39 }
  0x76   :  { %v155_v43 = vsel %vm153_vm12, %v323_v38, %v154_v17  ;;  %v259_v44 = vsel %vm257_vm13, %v323_v38, %v154_v17 }
  0x77   :  { %v159_v45 = vsel %vm152_vm14, %v155_v43, %v158_v41  ;;  %v263_v46 = vsel %vm256_vm15, %v259_v44, %v262_v42 }
  0x78   :  { %v160_v47 = vsel %vm150_vm0, nan, %v159_v45  ;;  %v264_v48 = vsel %vm150_vm0, nan, %v263_v46 }
  0x79   :  { %v271_v49 = vsel %vm270_vm1, %v160_v47, %v264_v48 }
  0x7a   :  { %272 = vst [vmem:[#allocation2] sm:$0x3] %v271_v49 }
  0x81   :  { %v275_v52 = vld [vmem:[#allocation2] sm:$0x3] }
  0x82   :  { %v276_v53 = vadd.f32 %v275_v52, %v273_v50  ;;  %v277_v54 = vadd.f32 %v275_v52, %v274_v51 }
  0x84   :  { %278 = vst [vmem:[#allocation8] sm:$0x3] %v276_v53  ;;  %279 = vst [vmem:[#allocation8 + $0x2] sm:$0x3] %v277_v54 }
  0x85   :  { %377 = shalt.err (!%p374_p0)
}
  0x86   :  { %291 = dma.vmem_to_hbm [thread:$0]  %s286_s1, 64, %s460_s2, [#allocation5], %s394_s17, %s394_s17, %s395_s18  }
  0x87   :  { %390 = dma.done.wait [#allocation5], 64  }
  0x88   :  { %391 = vsyncadd [#allocation5], 4294967232 }
  0x89   :  { %295 = vsyncpa [#allocation4], 1 }
  0x8a   :  { %296 = vsyncpa [#allocation7], 1 }
  0x8b   :  { %297 = vsyncpa [#allocation5], 1 }

</bundles_post_ra>
